<compile_context>
chip_gen: v7x
topology: tpu7x:2x2x1
jax: 0.10.0
libtpu: 0.0.40
codegen_flags: <defaults>
</compile_context>

<pallas_src>
import math
import functools

import numpy as np
import jax
import jax.numpy as jnp
from jax.experimental import pallas as pl
from jax.experimental.pallas import tpu as pltpu


# ---------------------------------------------------------------------------
# Host-side deterministic replacement for TreeTools / random_binary_full_tree
# ---------------------------------------------------------------------------
# TODO(synk): the exact `random_binary_full_tree` / `TreeTools` helpers are not
# provided; with shuffle=False we build the deterministic balanced full binary
# tree over leaves [0, n_nodes) (path bit 0 -> indicator +1, pad with +1).
def build_indicators(n_nodes):
    L = math.ceil(math.log(n_nodes, 2))
    ind = np.ones((n_nodes, L), dtype=np.float32)

    def rec(leaves, path):
        if len(leaves) == 1:
            for d, bit in enumerate(path):
                ind[leaves[0], d] = 1.0 if bit == 0 else -1.0
            return
        mid = len(leaves) // 2
        rec(leaves[:mid], path + [0])
        rec(leaves[mid:], path + [1])

    rec(list(range(n_nodes)), [])
    return jnp.asarray(ind), L


# ---------------------------------------------------------------------------
# Fused Pallas kernel: both HierSoftmax heads, TB batch rows per grid step.
# ---------------------------------------------------------------------------
def _joint_hs_kernel(w1_ref, i1_ref, x1_ref, w2_ref, i2_ref, x2_ref,
                     a1_ref, loss_ref,
                     s1_acc, s2_acc,
                     *, batch, tb, inv_sqrt_d1, inv_sqrt_d2):
    step = pl.program_id(0)

    # Zero the running probability sums on the first grid step.
    @pl.when(step == 0)
    def _():
        s1_acc[...] = jnp.zeros_like(s1_acc)
        s2_acc[...] = jnp.zeros_like(s2_acc)

    # Rows beyond the true batch size (zero padding) must not contribute.
    row0 = step * tb
    row_ids = row0 + jax.lax.broadcasted_iota(jnp.int32, (tb, 1), 0)   # (tb, 1)
    valid = row_ids < batch

    def head(w_ref, i_ref, xin_ref, inv_sqrt_d):
        a = w_ref[...] * i_ref[...]                                     # (tb, L, dim)
        # bmm(_a, _b)/sqrt(dim): elementwise mul + lane reduce (VPU + XLU)
        logits = jnp.sum(a * xin_ref[...], axis=-1) * inv_sqrt_d        # (tb, L)
        p = jax.nn.sigmoid(logits)
        # prod over levels as exp(sum(log p)) -> lane reduce + EUP, no lane slicing
        prod = jnp.exp(jnp.sum(jnp.log(p), axis=-1, keepdims=True))     # (tb, 1)
        prod = jnp.where(valid, prod, 0.0)
        return a, jnp.sum(prod, keepdims=True)                          # (1, 1)

    a1, part1 = head(w1_ref, i1_ref, x1_ref, inv_sqrt_d1)
    a1_ref[...] = a1                 # lane-dense (tb, L1, dim1) store
    s1_acc[...] += part1             # running sum of head-1 probs

    _, part2 = head(w2_ref, i2_ref, x2_ref, inv_sqrt_d2)
    s2_acc[...] += part2             # running sum of head-2 probs

    # Finalize the joint loss on the last grid step.
    @pl.when(step == pl.num_programs(0) - 1)
    def _():
        loss_ref[...] = -0.5 * (jnp.log(s1_acc[...]) + jnp.log(s2_acc[...]))


def joint_hier_softmax_forward(upair, post, W_u, ind_u, W_t, ind_t, *, tb=128):
    """Pallas implementation of JointHierSoftmax.forward -> (x, _a, _b)."""
    x_u, lbl_u = upair
    x_t, lbl_t = post
    B, dim_u = x_u.shape
    B_t, dim_t = x_t.shape
    assert B == B_t, "both heads must share the batch size"
    _, L_u = ind_u.shape
    _, L_t = ind_t.shape

    # Keep the row-tile a multiple of 8 (f32 sublanes) and avoid over-padding
    # small batches.
    tb = min(tb, ((B + 7) // 8) * 8)
    assert tb % 8 == 0
    grid = pl.cdiv(B, tb)
    b_pad = grid * tb
    pad = b_pad - B

    def gather(W, ind, labels, x, dim):
        labels = labels.astype(jnp.int32)
        if pad:
            labels = jnp.pad(labels, (0, pad))            # pad with a valid index
            x = jnp.pad(x, ((0, pad), (0, 0)))            # padded rows masked in-kernel
        w_g = jnp.take(jnp.transpose(W, (0, 2, 1)), labels, axis=0)  # (b_pad, L, dim)
        i_g = jnp.take(ind, labels, axis=0)[:, :, None]              # (b_pad, L, 1)
        x_g = x.reshape(b_pad, 1, dim)                               # (b_pad, 1, dim)
        return w_g, i_g, x_g

    w1, i1, x1 = gather(W_u, ind_u, lbl_u, x_u, dim_u)
    w2, i2, x2 = gather(W_t, ind_t, lbl_t, x_t, dim_t)

    kernel = functools.partial(
        _joint_hs_kernel, batch=B, tb=tb,
        inv_sqrt_d1=1.0 / math.sqrt(dim_u), inv_sqrt_d2=1.0 / math.sqrt(dim_t))

    a1, loss = pl.pallas_call(
        kernel,
        out_shape=(
            jax.ShapeDtypeStruct((b_pad, L_u, dim_u), jnp.float32),
            jax.ShapeDtypeStruct((1, 1), jnp.float32),
        ),
        grid=(grid,),
        in_specs=[
            pl.BlockSpec((tb, L_u, dim_u), lambda i: (i, 0, 0)),
            pl.BlockSpec((tb, L_u, 1), lambda i: (i, 0, 0)),
            pl.BlockSpec((tb, 1, dim_u), lambda i: (i, 0, 0)),
            pl.BlockSpec((tb, L_t, dim_t), lambda i: (i, 0, 0)),
            pl.BlockSpec((tb, L_t, 1), lambda i: (i, 0, 0)),
            pl.BlockSpec((tb, 1, dim_t), lambda i: (i, 0, 0)),
        ],
        out_specs=(
            pl.BlockSpec((tb, L_u, dim_u), lambda i: (i, 0, 0)),
            pl.BlockSpec((1, 1), lambda i: (0, 0)),        # resident accumulator output
        ),
        scratch_shapes=[
            pltpu.VMEM((1, 1), jnp.float32),               # sum of head-1 probs
            pltpu.VMEM((1, 1), jnp.float32),               # sum of head-2 probs
        ],
        compiler_params=pltpu.CompilerParams(
            dimension_semantics=("arbitrary",)),           # loss accumulates across batch blocks
    )(w1, i1, x1, w2, i2, x2)

    x = loss[0, 0]               # scalar joint loss
    _a = a1[:B]                  # (B, L_u, dim_u) == (ind*W).permute(0, 2, 1)
    _b = x_u[..., None]          # (B, dim_u, 1)   == inputs.unsqueeze(-1)
    return x, _a, _b


# ---------------------------------------------------------------------------
# Pure-JAX reference (mirrors the PyTorch code exactly)
# ---------------------------------------------------------------------------
def hier_softmax_ref(inputs, labels, W, indicators):
    _a = jnp.transpose(indicators[labels][:, None, :] * W[labels], (0, 2, 1))
    _b = inputs[..., None]
    probs = jnp.einsum('bld,bdo->blo', _a, _b) / math.sqrt(_a.shape[-1])
    probs = jax.nn.sigmoid(probs[..., 0])
    probs = jnp.prod(probs, axis=1)
    return probs, _a, _b


def joint_ref(upair, post, W_u, ind_u, W_t, ind_t):
    x1, _a, _b = hier_softmax_ref(upair[0], upair[1], W_u, ind_u)
    x2, _, _ = hier_softmax_ref(post[0], post[1], W_t, ind_t)
    x = -0.5 * (jnp.log(jnp.sum(x1)) + jnp.log(jnp.sum(x2)))
    return x, _a, _b


if __name__ == "__main__":
    key = jax.random.PRNGKey(0)
    B = 2
    upair_input, upair_output = 32, 8     # dim_u, n_nodes_u
    post_input, post_output = 16, 8       # dim_t, n_nodes_t

    ind_u, L_u = build_indicators(upair_output)   # (8, 3)
    ind_t, L_t = build_indicators(post_output)    # (8, 3)

    k1, k2, k3, k4, k5, k6 = jax.random.split(key, 6)
    # nn.Parameter(torch.rand(...)) -> uniform [0, 1)
    W_u = jax.random.uniform(k1, (upair_output, upair_input, L_u), dtype=jnp.float32)
    W_t = jax.random.uniform(k2, (post_output, post_input, L_t), dtype=jnp.float32)

    upair_x = jax.random.normal(k3, (B, upair_input), dtype=jnp.float32)
    upair_lbl = jax.random.randint(k4, (B,), 0, upair_output, dtype=jnp.int32)
    post_x = jax.random.normal(k5, (B, post_input), dtype=jnp.float32)
    post_lbl = jax.random.randint(k6, (B,), 0, post_output, dtype=jnp.int32)

    upair = (upair_x, upair_lbl)
    post = (post_x, post_lbl)

    x, _a, _b = joint_hier_softmax_forward(upair, post, W_u, ind_u, W_t, ind_t)
    jax.block_until_ready((x, _a, _b))

    x_ref, a_ref, b_ref = joint_ref(upair, post, W_u, ind_u, W_t, ind_t)
    np.testing.assert_allclose(np.asarray(x), np.asarray(x_ref), rtol=1e-5, atol=1e-5)
    np.testing.assert_allclose(np.asarray(_a), np.asarray(a_ref), rtol=1e-5, atol=1e-5)
    np.testing.assert_allclose(np.asarray(_b), np.asarray(b_ref), rtol=1e-5, atol=1e-5)

    print("KERNEL_OK")
</pallas_src>

<mosaic_0001>
module attributes {stable_mosaic.version = 11 : i64} {
  func.func @_joint_hs_kernel(%arg0: i32, %arg1: memref<8x3x32xf32, #tpu.memory_space<vmem>>, %arg2: memref<8x3x1xf32, #tpu.memory_space<vmem>>, %arg3: memref<8x1x32xf32, #tpu.memory_space<vmem>>, %arg4: memref<8x3x16xf32, #tpu.memory_space<vmem>>, %arg5: memref<8x3x1xf32, #tpu.memory_space<vmem>>, %arg6: memref<8x1x16xf32, #tpu.memory_space<vmem>>, %arg7: memref<8x3x32xf32, #tpu.memory_space<vmem>>, %arg8: memref<1x1xf32, #tpu.memory_space<vmem>>, %arg9: memref<1x1xf32, #tpu.memory_space<vmem>>, %arg10: memref<1x1xf32, #tpu.memory_space<vmem>>) attributes {dimension_semantics = [#tpu.dimension_semantics<arbitrary>], iteration_bounds = array<i64: 1>, scalar_prefetch = 0 : i64, scratch_operands = 2 : i64, tpu.core_type = #tpu.core_type<tc>, window_params = [{transform_indices = @transform_0, window_bounds = array<i64: 8, 3, 32>}, {transform_indices = @transform_1, window_bounds = array<i64: 8, 3, 1>}, {transform_indices = @transform_2, window_bounds = array<i64: 8, 1, 32>}, {transform_indices = @transform_3, window_bounds = array<i64: 8, 3, 16>}, {transform_indices = @transform_4, window_bounds = array<i64: 8, 3, 1>}, {transform_indices = @transform_5, window_bounds = array<i64: 8, 1, 16>}, {transform_indices = @transform_6, window_bounds = array<i64: 8, 3, 32>}, {pipeline_mode = #tpu.pipeline_mode<synchronous>, transform_indices = @transform_7, window_bounds = array<i64: 1, 1>}]} {
    %c0_i32 = arith.constant 0 : i32
    %0 = arith.cmpi eq, %arg0, %c0_i32 : i32
    %1 = arith.extui %0 : i1 to i32
    %c0_i32_0 = arith.constant 0 : i32
    %2 = arith.cmpi ne, %1, %c0_i32_0 : i32
    scf.if %2 {
      %cst_42 = arith.constant 0.000000e+00 : f32
      %71 = vector.broadcast %cst_42 : f32 to vector<1x1xf32>
      %c0_43 = arith.constant 0 : index
      %c0_44 = arith.constant 0 : index
      %72 = vector.load %arg9[%c0_43, %c0_44] : memref<1x1xf32, #tpu.memory_space<vmem>>, vector<1x1xf32>
      tpu.vector_store %arg9[%c0_43, %c0_44], %71 {strides = array<i32>} : memref<1x1xf32, #tpu.memory_space<vmem>>, vector<1x1xf32>,
      %cst_45 = arith.constant 0.000000e+00 : f32
      %73 = vector.broadcast %cst_45 : f32 to vector<1x1xf32>
      %c0_46 = arith.constant 0 : index
      %c0_47 = arith.constant 0 : index
      %74 = vector.load %arg10[%c0_46, %c0_47] : memref<1x1xf32, #tpu.memory_space<vmem>>, vector<1x1xf32>
      tpu.vector_store %arg10[%c0_46, %c0_47], %73 {strides = array<i32>} : memref<1x1xf32, #tpu.memory_space<vmem>>, vector<1x1xf32>,
    } else {
    }
    %c8_i32 = arith.constant 8 : i32
    %3 = arith.muli %arg0, %c8_i32 : i32
    %4 = tpu.iota {dimensions = array<i32: 0>} : vector<8x1xi32>
    %5 = vector.broadcast %3 : i32 to vector<8x1xi32>
    %6 = arith.addi %5, %4 : vector<8x1xi32>
    %c2_i32 = arith.constant 2 : i32
    %7 = vector.broadcast %c2_i32 : i32 to vector<8x1xi32>
    %8 = arith.cmpi slt, %6, %7 : vector<8x1xi32>
    %c0 = arith.constant 0 : index
    %c0_1 = arith.constant 0 : index
    %c0_2 = arith.constant 0 : index
    %9 = vector.load %arg1[%c0, %c0_1, %c0_2] : memref<8x3x32xf32, #tpu.memory_space<vmem>>, vector<8x3x32xf32>
    %c0_3 = arith.constant 0 : index
    %c0_4 = arith.constant 0 : index
    %c0_5 = arith.constant 0 : index
    %10 = vector.load %arg2[%c0_3, %c0_4, %c0_5] : memref<8x3x1xf32, #tpu.memory_space<vmem>>, vector<8x3x1xf32>
    %11 = vector.broadcast %10 : vector<8x3x1xf32> to vector<8x3x32xf32>
    %12 = arith.mulf %9, %11 : vector<8x3x32xf32>
    %c0_6 = arith.constant 0 : index
    %c0_7 = arith.constant 0 : index
    %c0_8 = arith.constant 0 : index
    %13 = vector.load %arg3[%c0_6, %c0_7, %c0_8] : memref<8x1x32xf32, #tpu.memory_space<vmem>>, vector<8x1x32xf32>
    %14 = vector.broadcast %13 : vector<8x1x32xf32> to vector<8x3x32xf32>
    %15 = arith.mulf %12, %14 : vector<8x3x32xf32>
    %cst = arith.constant dense<0.000000e+00> : vector<8x3xf32>
    %16 = vector.multi_reduction <add>, %15, %cst [2] : vector<8x3x32xf32> to vector<8x3xf32>
    %cst_9 = arith.constant 0.176776692 : f32
    %17 = vector.broadcast %cst_9 : f32 to vector<8x3xf32>
    %18 = arith.mulf %16, %17 : vector<8x3xf32>
    %19 = arith.negf %18 : vector<8x3xf32>
    %20 = math.exp %19 : vector<8x3xf32>
    %cst_10 = arith.constant 1.000000e+00 : f32
    %21 = vector.broadcast %cst_10 : f32 to vector<8x3xf32>
    %22 = arith.addf %21, %20 : vector<8x3xf32>
    %23 = arith.divf %21, %22 : vector<8x3xf32>
    %24 = math.log %23 : vector<8x3xf32>
    %cst_11 = arith.constant dense<0.000000e+00> : vector<8xf32>
    %25 = vector.multi_reduction <add>, %24, %cst_11 [1] : vector<8x3xf32> to vector<8xf32>
    %26 = vector.shape_cast %25 : vector<8xf32> to vector<8x1xf32>
    %27 = math.exp %26 : vector<8x1xf32>
    %cst_12 = arith.constant 0.000000e+00 : f32
    %28 = vector.broadcast %cst_12 : f32 to vector<8x1xf32>
    %29 = arith.select %8, %27, %28 : vector<8x1xi1>, vector<8x1xf32>
    %30 = vector.shape_cast %29 : vector<8x1xf32> to vector<1x8x1xf32>
    %cst_13 = arith.constant dense<0.000000e+00> : vector<1xf32>
    %31 = vector.multi_reduction <add>, %30, %cst_13 [1, 2] : vector<1x8x1xf32> to vector<1xf32>
    %32 = vector.shape_cast %31 : vector<1xf32> to vector<1x1x1xf32>
    %33 = vector.extract %32[0, 0, 0] : f32 from vector<1x1x1xf32>
    %34 = vector.broadcast %33 : f32 to vector<1x1xf32>
    %c0_14 = arith.constant 0 : index
    %c0_15 = arith.constant 0 : index
    %c0_16 = arith.constant 0 : index
    %35 = vector.load %arg7[%c0_14, %c0_15, %c0_16] : memref<8x3x32xf32, #tpu.memory_space<vmem>>, vector<8x3x32xf32>
    tpu.vector_store %arg7[%c0_14, %c0_15, %c0_16], %12 {strides = array<i32>} : memref<8x3x32xf32, #tpu.memory_space<vmem>>, vector<8x3x32xf32>,
    %c0_17 = arith.constant 0 : index
    %c0_18 = arith.constant 0 : index
    %36 = vector.load %arg9[%c0_17, %c0_18] : memref<1x1xf32, #tpu.memory_space<vmem>>, vector<1x1xf32>
    %37 = arith.addf %36, %34 : vector<1x1xf32>
    %c0_19 = arith.constant 0 : index
    %c0_20 = arith.constant 0 : index
    %38 = vector.load %arg9[%c0_19, %c0_20] : memref<1x1xf32, #tpu.memory_space<vmem>>, vector<1x1xf32>
    tpu.vector_store %arg9[%c0_19, %c0_20], %37 {strides = array<i32>} : memref<1x1xf32, #tpu.memory_space<vmem>>, vector<1x1xf32>,
    %c0_21 = arith.constant 0 : index
    %c0_22 = arith.constant 0 : index
    %c0_23 = arith.constant 0 : index
    %39 = vector.load %arg4[%c0_21, %c0_22, %c0_23] : memref<8x3x16xf32, #tpu.memory_space<vmem>>, vector<8x3x16xf32>
    %c0_24 = arith.constant 0 : index
    %c0_25 = arith.constant 0 : index
    %c0_26 = arith.constant 0 : index
    %40 = vector.load %arg5[%c0_24, %c0_25, %c0_26] : memref<8x3x1xf32, #tpu.memory_space<vmem>>, vector<8x3x1xf32>
    %41 = vector.broadcast %40 : vector<8x3x1xf32> to vector<8x3x16xf32>
    %42 = arith.mulf %39, %41 : vector<8x3x16xf32>
    %c0_27 = arith.constant 0 : index
    %c0_28 = arith.constant 0 : index
    %c0_29 = arith.constant 0 : index
    %43 = vector.load %arg6[%c0_27, %c0_28, %c0_29] : memref<8x1x16xf32, #tpu.memory_space<vmem>>, vector<8x1x16xf32>
    %44 = vector.broadcast %43 : vector<8x1x16xf32> to vector<8x3x16xf32>
    %45 = arith.mulf %42, %44 : vector<8x3x16xf32>
    %cst_30 = arith.constant dense<0.000000e+00> : vector<8x3xf32>
    %46 = vector.multi_reduction <add>, %45, %cst_30 [2] : vector<8x3x16xf32> to vector<8x3xf32>
    %cst_31 = arith.constant 2.500000e-01 : f32
    %47 = vector.broadcast %cst_31 : f32 to vector<8x3xf32>
    %48 = arith.mulf %46, %47 : vector<8x3xf32>
    %49 = arith.negf %48 : vector<8x3xf32>
    %50 = math.exp %49 : vector<8x3xf32>
    %cst_32 = arith.constant 1.000000e+00 : f32
    %51 = vector.broadcast %cst_32 : f32 to vector<8x3xf32>
    %52 = arith.addf %51, %50 : vector<8x3xf32>
    %53 = arith.divf %51, %52 : vector<8x3xf32>
    %54 = math.log %53 : vector<8x3xf32>
    %cst_33 = arith.constant dense<0.000000e+00> : vector<8xf32>
    %55 = vector.multi_reduction <add>, %54, %cst_33 [1] : vector<8x3xf32> to vector<8xf32>
    %56 = vector.shape_cast %55 : vector<8xf32> to vector<8x1xf32>
    %57 = math.exp %56 : vector<8x1xf32>
    %cst_34 = arith.constant 0.000000e+00 : f32
    %58 = vector.broadcast %cst_34 : f32 to vector<8x1xf32>
    %59 = arith.select %8, %57, %58 : vector<8x1xi1>, vector<8x1xf32>
    %60 = vector.shape_cast %59 : vector<8x1xf32> to vector<1x8x1xf32>
    %cst_35 = arith.constant dense<0.000000e+00> : vector<1xf32>
    %61 = vector.multi_reduction <add>, %60, %cst_35 [1, 2] : vector<1x8x1xf32> to vector<1xf32>
    %62 = vector.shape_cast %61 : vector<1xf32> to vector<1x1x1xf32>
    %63 = vector.extract %62[0, 0, 0] : f32 from vector<1x1x1xf32>
    %64 = vector.broadcast %63 : f32 to vector<1x1xf32>
    %c0_36 = arith.constant 0 : index
    %c0_37 = arith.constant 0 : index
    %65 = vector.load %arg10[%c0_36, %c0_37] : memref<1x1xf32, #tpu.memory_space<vmem>>, vector<1x1xf32>
    %66 = arith.addf %65, %64 : vector<1x1xf32>
    %c0_38 = arith.constant 0 : index
    %c0_39 = arith.constant 0 : index
    %67 = vector.load %arg10[%c0_38, %c0_39] : memref<1x1xf32, #tpu.memory_space<vmem>>, vector<1x1xf32>
    tpu.vector_store %arg10[%c0_38, %c0_39], %66 {strides = array<i32>} : memref<1x1xf32, #tpu.memory_space<vmem>>, vector<1x1xf32>,
    %c0_i32_40 = arith.constant 0 : i32
    %68 = arith.cmpi eq, %arg0, %c0_i32_40 : i32
    %69 = arith.extui %68 : i1 to i32
    %c0_i32_41 = arith.constant 0 : i32
    %70 = arith.cmpi ne, %69, %c0_i32_41 : i32
    scf.if %70 {
      %c0_42 = arith.constant 0 : index
      %c0_43 = arith.constant 0 : index
      %71 = vector.load %arg9[%c0_42, %c0_43] : memref<1x1xf32, #tpu.memory_space<vmem>>, vector<1x1xf32>
      %72 = math.log %71 : vector<1x1xf32>
      %c0_44 = arith.constant 0 : index
      %c0_45 = arith.constant 0 : index
      %73 = vector.load %arg10[%c0_44, %c0_45] : memref<1x1xf32, #tpu.memory_space<vmem>>, vector<1x1xf32>
      %74 = math.log %73 : vector<1x1xf32>
      %75 = arith.addf %72, %74 : vector<1x1xf32>
      %cst_46 = arith.constant -5.000000e-01 : f32
      %76 = vector.broadcast %cst_46 : f32 to vector<1x1xf32>
      %77 = arith.mulf %76, %75 : vector<1x1xf32>
      %c0_47 = arith.constant 0 : index
      %c0_48 = arith.constant 0 : index
      %78 = vector.load %arg8[%c0_47, %c0_48] : memref<1x1xf32, #tpu.memory_space<vmem>>, vector<1x1xf32>
      tpu.vector_store %arg8[%c0_47, %c0_48], %77 {strides = array<i32>} : memref<1x1xf32, #tpu.memory_space<vmem>>, vector<1x1xf32>,
    } else {
    }
    return
  }
  func.func @transform_0(%arg0: i32) -> (i32, i32, i32) {
    %c0_i32 = arith.constant 0 : i32
    %c0_i32_0 = arith.constant 0 : i32
    %c0_i32_1 = arith.constant 0 : i32
    return %arg0, %c0_i32, %c0_i32_0 : i32, i32, i32
  }
  func.func @transform_1(%arg0: i32) -> (i32, i32, i32) {
    %c0_i32 = arith.constant 0 : i32
    %c0_i32_0 = arith.constant 0 : i32
    %c0_i32_1 = arith.constant 0 : i32
    return %arg0, %c0_i32, %c0_i32_0 : i32, i32, i32
  }
  func.func @transform_2(%arg0: i32) -> (i32, i32, i32) {
    %c0_i32 = arith.constant 0 : i32
    %c0_i32_0 = arith.constant 0 : i32
    %c0_i32_1 = arith.constant 0 : i32
    return %arg0, %c0_i32, %c0_i32_0 : i32, i32, i32
  }
  func.func @transform_3(%arg0: i32) -> (i32, i32, i32) {
    %c0_i32 = arith.constant 0 : i32
    %c0_i32_0 = arith.constant 0 : i32
    %c0_i32_1 = arith.constant 0 : i32
    return %arg0, %c0_i32, %c0_i32_0 : i32, i32, i32
  }
  func.func @transform_4(%arg0: i32) -> (i32, i32, i32) {
    %c0_i32 = arith.constant 0 : i32
    %c0_i32_0 = arith.constant 0 : i32
    %c0_i32_1 = arith.constant 0 : i32
    return %arg0, %c0_i32, %c0_i32_0 : i32, i32, i32
  }
  func.func @transform_5(%arg0: i32) -> (i32, i32, i32) {
    %c0_i32 = arith.constant 0 : i32
    %c0_i32_0 = arith.constant 0 : i32
    %c0_i32_1 = arith.constant 0 : i32
    return %arg0, %c0_i32, %c0_i32_0 : i32, i32, i32
  }
  func.func @transform_6(%arg0: i32) -> (i32, i32, i32) {
    %c0_i32 = arith.constant 0 : i32
    %c0_i32_0 = arith.constant 0 : i32
    %c0_i32_1 = arith.constant 0 : i32
    return %arg0, %c0_i32, %c0_i32_0 : i32, i32, i32
  }
  func.func @transform_7(%arg0: i32) -> (i32, i32) {
    %c0_i32 = arith.constant 0 : i32
    %c0_i32_0 = arith.constant 0 : i32
    %c0_i32_1 = arith.constant 0 : i32
    return %c0_i32, %c0_i32_0 : i32, i32
  }
}

</mosaic_0001>

<bundles_post_ra>
// kernel: tpu_custom_call.1
= control target key start
LH: loop header
LB: loop body
LE: loop exit
PB: predicated region body
PF: predicated region fallthrough
CT: control target
= control target key end

     0   :  { %v844_v2 = vmov 0   ;;  %s1134_s0 = inlined_call_operand.vmem [shape: f32[8,3,32], index: 0, kind: input, shape index: {}]   ;;  %s1135_s1 = inlined_call_operand.vmem [shape: f32[8,3,1], index: 1, kind: input, shape index: {}]   ;;  %s1136_s2 = inlined_call_operand.vmem [shape: f32[8,1,32], index: 2, kind: input, shape index: {}]   ;;  %s1137_s3 = inlined_call_operand.vmem [shape: f32[8,3,16], index: 3, kind: input, shape index: {}]   ;;  %s1138_s4 = inlined_call_operand.vmem [shape: f32[8,3,1], index: 4, kind: input, shape index: {}]   ;;  %s1139_s5 = inlined_call_operand.vmem [shape: f32[8,1,16], index: 5, kind: input, shape index: {}]   ;;  %s1140_s6 = inlined_call_operand.vmem [shape: f32[8,3,32], index: 6, kind: output, shape index: {0}]   ;;  %s1141_s7 = inlined_call_operand.hbm [shape: f32[1,1], index: 7, kind: output, shape index: {1}]  }
   0x1   :  { %v360_v0 = vld [vmem:[%s1138_s4] sm:$0x7]  ;;  %715 = vset.pattern.permute.xlu1 %v844_v2  ;;  %714 = vset.pattern.permute.xlu0 %v844_v2  ;;  %v361_v3 = vld [vmem:[%s1138_s4 + $0x4] sm:$0x7]  ;;  %v362_v5 = vld [vmem:[%s1138_s4 + $0x8] sm:$0x7] }
   0x2   :  { %v47_v1 = vld [vmem:[%s1135_s1] sm:$0x7]  ;;  %370 = vperm.xlu1 %715, %v360_v0   ;;  %v48_v4 = vld [vmem:[%s1135_s1 + $0x4] sm:$0x7]  ;;  %v49_v6 = vld [vmem:[%s1135_s1 + $0x8] sm:$0x7] }
   0x3   :  { %57 = vperm.xlu0 %714, %v47_v1  }
   0x6   :  { %375 = vperm.xlu1 %715, %v361_v3  }
   0x7   :  { %62 = vperm.xlu0 %714, %v48_v4  }
   0x8   :  { %13 = vsyncpa [#allocation5], 0  ;;  %v363_v7 = vld [vmem:[%s1138_s4 + $0xc] sm:$0x7]  ;;  %v364_v9 = vld [vmem:[%s1138_s4 + $0x10] sm:$0x7] }
   0x9   :  { %v50_v8 = vld [vmem:[%s1135_s1 + $0xc] sm:$0x7]  ;;  %v51_v10 = vld [vmem:[%s1135_s1 + $0x10] sm:$0x7]  ;;  %v365_v11 = vld [vmem:[%s1138_s4 + $0x14] sm:$0x7] }
   0xa   :  { %380 = vperm.xlu1 %715, %v362_v5   ;;  %v52_v12 = vld [vmem:[%s1135_s1 + $0x14] sm:$0x7]  ;;  %v366_v13 = vld [vmem:[%s1138_s4 + $0x18] sm:$0x7]  ;;  %v367_v15 = vld [vmem:[%s1138_s4 + $0x1c] sm:$0x7] }
   0xb   :  { %67 = vperm.xlu0 %714, %v49_v6   ;;  %v53_v14 = vld [vmem:[%s1135_s1 + $0x18] sm:$0x7]  ;;  %v54_v16 = vld [vmem:[%s1135_s1 + $0x1c] sm:$0x7]  ;;  %v352_v17 = vld [vmem:[%s1137_s3] sm:$0x7] }
   0xc   :  { %v39_v18 = vld [vmem:[%s1134_s0] sm:$0x7]  ;;  %vm167_vm0 = vcmask 256000   ;;  %v353_v25 = vld [vmem:[%s1137_s3 + $0x4] sm:$0x7]  ;;  %vm480_vm1 = vcmask 124928  }
   0xd   :  { %v675_v21 = vld [vmem:[%s1136_s2] ss:$0 sm:$0xff]  ;;  %v40_v26 = vld [vmem:[%s1134_s0 + $0x4] sm:$0x7]  ;;  %v676_v31 = vld [vmem:[%s1136_s2 + $0x1] ss:$0 sm:$0xff] }
   0xe   :  { %385 = vperm.xlu1 %715, %v363_v7   ;;  %v691_v22 = vld [vmem:[%s1139_s5] ss:$0 sm:$0xff]  ;;  %v692_v35 = vld [vmem:[%s1139_s5 + $0x1] ss:$0 sm:$0xff]  ;;  %v354_v36 = vld [vmem:[%s1137_s3 + $0x8] sm:$0x7] }
   0xf   :  { %72 = vperm.xlu0 %714, %v50_v8   ;;  %v41_v37 = vld [vmem:[%s1134_s0 + $0x8] sm:$0x7]  ;;  %v677_v42 = vld [vmem:[%s1136_s2 + $0x2] ss:$0 sm:$0xff]  ;;  %v355_v47 = vld [vmem:[%s1137_s3 + $0xc] sm:$0x7] }
  0x10   :  { %v42_v48 = vld [vmem:[%s1134_s0 + $0xc] sm:$0x7]  ;;  %v693_v49 = vld [vmem:[%s1139_s5 + $0x2] ss:$0 sm:$0xff]  ;;  %v678_v54 = vld [vmem:[%s1136_s2 + $0x3] ss:$0 sm:$0xff] }
  0x11   :  { %v694_v59 = vld [vmem:[%s1139_s5 + $0x3] ss:$0 sm:$0xff]  ;;  %v356_v60 = vld [vmem:[%s1137_s3 + $0x10] sm:$0x7]  ;;  %v679_v1 = vld [vmem:[%s1136_s2 + $0x4] ss:$0 sm:$0xff] }
  0x12   :  { %390 = vperm.xlu1 %715, %v364_v9   ;;  %v43_v61 = vld [vmem:[%s1134_s0 + $0x10] sm:$0x7]  ;;  %v357_v7 = vld [vmem:[%s1137_s3 + $0x14] sm:$0x7]  ;;  %v695_v9 = vld [vmem:[%s1139_s5 + $0x4] ss:$0 sm:$0xff] }
  0x13   :  { %77 = vperm.xlu0 %714, %v51_v10   ;;  %v44_v8 = vld [vmem:[%s1134_s0 + $0x14] sm:$0x7]  ;;  %vm306_vm2 = vcmask 1041409   ;;  %vm308_vm3 = vcmask 1042434   ;;  %vm310_vm4 = vcmask 1043459   ;;  %vm312_vm5 = vcmask 1044484  }
  0x14   :  { %vm314_vm6 = vcmask 1045509   ;;  %vm316_vm7 = vcmask 1046534   ;;  %vm318_vm8 = vcmask 1047559   ;;  %vm321_vm9 = vcmask 23552  }
  0x15   :  { %vm328_vm11 = vcmask 7168   ;;  %vm30_vm12 = vcmask 0  }
  0x16   :  { %395 = vperm.xlu1 %715, %v365_v11  }
  0x17   :  { %82 = vperm.xlu0 %714, %v52_v12  }
  0x1a   :  { %400 = vperm.xlu1 %715, %v366_v13  }
  0x1b   :  { %87 = vperm.xlu0 %714, %v53_v14   ;;  %v680_v14 = vld [vmem:[%s1136_s2 + $0x5] ss:$0 sm:$0xff] }
  0x1e   :  { %405 = vperm.xlu1 %715, %v367_v15  }
  0x1f   :  { %92 = vperm.xlu0 %714, %v54_v16  }
  0x81   :  { %v371_v19 = vpop.permute.xlu1 %370 }
  0x82   :  { %v58_v20 = vpop.permute.xlu0 %57  ;;  %v408_v23 = vmul.f32 %v371_v19, %v352_v17  ;;  %v696_v19 = vld [vmem:[%s1139_s5 + $0x5] ss:$0 sm:$0xff] }
  0x83   :  { %v95_v24 = vmul.f32 %v58_v20, %v39_v18  ;;  %v358_v20 = vld [vmem:[%s1137_s3 + $0x18] sm:$0x7] }
  0x84   :  { %v472_v28 = vmul.f32 %v691_v22, %v408_v23 }
  0x85   :  { %340 = vst.msk [vmem:[%s1140_s6] sm:$0x7] %vm167_vm0, %v95_v24  ;;  %v159_v27 = vmul.f32 %v675_v21, %v95_v24  ;;  %v376_v29 = vpop.permute.xlu1 %375  ;;  %v45_v21 = vld [vmem:[%s1134_s0 + $0x18] sm:$0x7] }
  0x86   :  { %v63_v30 = vpop.permute.xlu0 %62  ;;  %v409_v32 = vmul.f32 %v376_v29, %v353_v25  ;;  %v481_v39 = vsel %vm480_vm1, %v472_v28, 0.0  ;;  %v681_v25 = vld [vmem:[%s1136_s2 + $0x6] ss:$0 sm:$0xff] }
  0x87   :  { %v96_v33 = vmul.f32 %v63_v30, %v40_v26  ;;  %v168_v34 = vsel %vm167_vm0, %v159_v27, 0.0 }
  0x88   :  { %169 = vadd.xlane.f32.xlu0 %v168_v34  ;;  %v473_v43 = vmul.f32 %v692_v35, %v409_v32  ;;  %v46_v32 = vld [vmem:[%s1134_s0 + $0x1c] sm:$0x7] }
  0x89   :  { %341 = vst.msk [vmem:[%s1140_s6 + $0x4] sm:$0x7] %vm167_vm0, %v96_v33  ;;  %v160_v38 = vmul.f32 %v676_v31, %v96_v33  ;;  %v381_v40 = vpop.permute.xlu1 %380  ;;  %v359_v31 = vld [vmem:[%s1137_s3 + $0x1c] sm:$0x7]  ;;  %v697_v33 = vld [vmem:[%s1139_s5 + $0x6] ss:$0 sm:$0xff] }
  0x8a   :  { %v68_v41 = vpop.permute.xlu0 %67  ;;  %v410_v44 = vmul.f32 %v381_v40, %v354_v36  ;;  %v484_v53 = vsel %vm480_vm1, %v473_v43, 0.0  ;;  %v698_v43 = vld [vmem:[%s1139_s5 + $0x7] ss:$0 sm:$0xff] }
  0x8b   :  { %v97_v45 = vmul.f32 %v68_v41, %v41_v37  ;;  %v171_v46 = vsel %vm167_vm0, %v160_v38, 0.0  ;;  %v682_v38 = vld [vmem:[%s1136_s2 + $0x7] ss:$0 sm:$0xff] }
  0x8c   :  { %172 = vadd.xlane.f32.xlu1 %v171_v46  ;;  %482 = vadd.xlane.f32.xlu0 %v481_v39  ;;  %v474_v58 = vmul.f32 %v693_v49, %v410_v44 }
  0x8d   :  { %342 = vst.msk [vmem:[%s1140_s6 + $0x8] sm:$0x7] %vm167_vm0, %v97_v45  ;;  %v161_v50 = vmul.f32 %v677_v42, %v97_v45  ;;  %v386_v51 = vpop.permute.xlu1 %385 }
  0x8e   :  { %v73_v52 = vpop.permute.xlu0 %72  ;;  %v411_v55 = vmul.f32 %v386_v51, %v355_v47  ;;  %v487_v6 = vsel %vm480_vm1, %v474_v58, 0.0 }
  0x8f   :  { %v98_v56 = vmul.f32 %v73_v52, %v42_v48  ;;  %v174_v57 = vsel %vm167_vm0, %v161_v50, 0.0 }
  0x90   :  { %175 = vadd.xlane.f32.xlu1 %v174_v57  ;;  %485 = vadd.xlane.f32.xlu0 %v484_v53  ;;  %v475_v2 = vmul.f32 %v694_v59, %v411_v55 }
  0x91   :  { %343 = vst.msk [vmem:[%s1140_s6 + $0xc] sm:$0x7] %vm167_vm0, %v98_v56  ;;  %v162_v62 = vmul.f32 %v678_v54, %v98_v56  ;;  %v391_v63 = vpop.permute.xlu1 %390 }
  0x92   :  { %v78_v0 = vpop.permute.xlu0 %77  ;;  %v412_v3 = vmul.f32 %v391_v63, %v356_v60  ;;  %v490_v13 = vsel %vm480_vm1, %v475_v2, 0.0 }
  0x93   :  { %v99_v4 = vmul.f32 %v78_v0, %v43_v61  ;;  %v177_v5 = vsel %vm167_vm0, %v162_v62, 0.0 }
  0x94   :  { %178 = vadd.xlane.f32.xlu1 %v177_v5  ;;  %488 = vadd.xlane.f32.xlu0 %v487_v6  ;;  %v476_v18 = vmul.f32 %v695_v9, %v412_v3 }
  0x95   :  { %344 = vst.msk [vmem:[%s1140_s6 + $0x10] sm:$0x7] %vm167_vm0, %v99_v4  ;;  %v163_v10 = vmul.f32 %v679_v1, %v99_v4  ;;  %v396_v11 = vpop.permute.xlu1 %395 }
  0x96   :  { %v83_v12 = vpop.permute.xlu0 %82  ;;  %v413_v15 = vmul.f32 %v396_v11, %v357_v7  ;;  %v493_v30 = vsel %vm480_vm1, %v476_v18, 0.0 }
  0x97   :  { %v100_v16 = vmul.f32 %v83_v12, %v44_v8  ;;  %v180_v17 = vsel %vm167_vm0, %v163_v10, 0.0 }
  0x98   :  { %181 = vadd.xlane.f32.xlu1 %v180_v17  ;;  %491 = vadd.xlane.f32.xlu0 %v490_v13  ;;  %v477_v26 = vmul.f32 %v696_v19, %v413_v15 }
  0x99   :  { %345 = vst.msk [vmem:[%s1140_s6 + $0x14] sm:$0x7] %vm167_vm0, %v100_v16  ;;  %v164_v22 = vmul.f32 %v680_v14, %v100_v16  ;;  %v401_v23 = vpop.permute.xlu1 %400 }
  0x9a   :  { %v88_v24 = vpop.permute.xlu0 %87  ;;  %v414_v27 = vmul.f32 %v401_v23, %v358_v20  ;;  %v496_v37 = vsel %vm480_vm1, %v477_v26, 0.0 }
  0x9b   :  { %v101_v28 = vmul.f32 %v88_v24, %v45_v21  ;;  %v183_v29 = vsel %vm167_vm0, %v164_v22, 0.0 }
  0x9c   :  { %184 = vadd.xlane.f32.xlu1 %v183_v29  ;;  %494 = vadd.xlane.f32.xlu0 %v493_v30  ;;  %v478_v42 = vmul.f32 %v697_v33, %v414_v27 }
  0x9d   :  { %346 = vst.msk [vmem:[%s1140_s6 + $0x18] sm:$0x7] %vm167_vm0, %v101_v28  ;;  %v165_v34 = vmul.f32 %v681_v25, %v101_v28  ;;  %v406_v35 = vpop.permute.xlu1 %405 }
  0x9e   :  { %v93_v36 = vpop.permute.xlu0 %92  ;;  %v415_v39 = vmul.f32 %v406_v35, %v359_v31  ;;  %v499_v46 = vsel %vm480_vm1, %v478_v42, 0.0 }
  0x9f   :  { %v102_v40 = vmul.f32 %v93_v36, %v46_v32  ;;  %v186_v41 = vsel %vm167_vm0, %v165_v34, 0.0 }
  0xa0   :  { %187 = vadd.xlane.f32.xlu1 %v186_v41  ;;  %497 = vadd.xlane.f32.xlu0 %v496_v37  ;;  %v479_v47 = vmul.f32 %v698_v43, %v415_v39 }
  0xa1   :  { %347 = vst.msk [vmem:[%s1140_s6 + $0x1c] sm:$0x7] %vm167_vm0, %v102_v40  ;;  %v166_v44 = vmul.f32 %v682_v38, %v102_v40  ;;  %s846_s6 = smov [#allocation4]  }
  0xa2   :  { %v502_v48 = vsel %vm480_vm1, %v479_v47, 0.0  ;;  %s665_s13 = sshll.u32 %s846_s6, 4  ;;  %s666_s13 = int_to_ptr.vmem [resolvable:$true] %s665_s13 }
  0xa3   :  { %v189_v45 = vsel %vm167_vm0, %v166_v44, 0.0  ;;  %s820_s14 = scalar_lea.vmem %s666_s13, 16  ;;  %s824_s15 = scalar_lea.vmem %s666_s13, 32 }
  0xa4   :  { %190 = vadd.xlane.f32.xlu1 %v189_v45  ;;  %500 = vadd.xlane.f32.xlu0 %v499_v46  ;;  %p821_p0 = scmp.ne.s32.totalorder %s666_s13, %s820_s14  ;;  %p825_p1 = scmp.lt.s32.totalorder %s666_s13, %s666_s13 }
  0xa5   :  { %p826_p2 = scmp.lt.s32.totalorder %s824_s15, %s820_s14 }
  0xa7   :  { %p827_p3 = por %p826_p2, %p825_p1 }
  0xa8   :  { %503 = vadd.xlane.f32.xlu0 %v502_v48 }
  0xa9   :  { %p828_p4 = pnand %p827_p3, %p821_p0 }
 0x115   :  { %v170_v49 = vpop.xlane.xlu0 %169 }
 0x116   :  { %v683_v50 = vmul.f32 -0.17677669, %v170_v49 }
 0x118   :  { %v208_v51 = vmul.f32 1.442695, %v683_v50 }
 0x119   :  { %v173_v52 = vpop.xlane.xlu1 %172  ;;  %v483_v53 = vpop.xlane.xlu0 %482 }
 0x11a   :  { %v684_v54 = vmul.f32 -0.17677669, %v173_v52  ;;  %716 = vpow2.f32 %v208_v51  ;;  %v699_v58 = vmul.f32 -0.25, %v483_v53 }
 0x11c   :  { %v210_v55 = vmul.f32 1.442695, %v684_v54  ;;  %v521_v63 = vmul.f32 1.442695, %v699_v58 }
 0x11d   :  { %v176_v56 = vpop.xlane.xlu1 %175  ;;  %v486_v57 = vpop.xlane.xlu0 %485 }
 0x11e   :  { %718 = vpow2.f32 %v210_v55  ;;  %v685_v59 = vmul.f32 -0.17677669, %v176_v56  ;;  %v700_v62 = vmul.f32 -0.25, %v486_v57 }
 0x11f   :  { %720 = vpow2.f32 %v521_v63 }
 0x120   :  { %v212_v1 = vmul.f32 1.442695, %v685_v59  ;;  %v523_v5 = vmul.f32 1.442695, %v700_v62 }
 0x121   :  { %v179_v60 = vpop.xlane.xlu1 %178  ;;  %v489_v61 = vpop.xlane.xlu0 %488 }
 0x122   :  { %v686_v0 = vmul.f32 -0.17677669, %v179_v60  ;;  %v701_v2 = vmul.f32 -0.25, %v489_v61  ;;  %722 = vpow2.f32 %v212_v1 }
 0x123   :  { %724 = vpow2.f32 %v523_v5 }
 0x124   :  { %v717_v6 = vpop.eup %716  ;;  %v214_v8 = vmul.f32 1.442695, %v686_v0  ;;  %v525_v9 = vmul.f32 1.442695, %v701_v2 }
 0x125   :  { %v182_v3 = vpop.xlane.xlu1 %181  ;;  %v492_v4 = vpop.xlane.xlu0 %491  ;;  %v224_v12 = vadd.f32 1.0, %v717_v6 }
 0x126   :  { %v687_v7 = vmul.f32 -0.17677669, %v182_v3  ;;  %726 = vpow2.f32 %v214_v8  ;;  %v702_v19 = vmul.f32 -0.25, %v492_v4 }
 0x127   :  { %728 = vpow2.f32 %v525_v9 }
 0x128   :  { %v719_v14 = vpop.eup %718  ;;  %v216_v15 = vmul.f32 1.442695, %v687_v7  ;;  %730 = vrcp.f32 %v224_v12  ;;  %v527_v26 = vmul.f32 1.442695, %v702_v19  ;;  %v34_v19 = vlaneseq }
 0x129   :  { %v185_v10 = vpop.xlane.xlu1 %184  ;;  %v495_v11 = vpop.xlane.xlu0 %494  ;;  %v225_v18 = vadd.f32 1.0, %v719_v14 }
 0x12a   :  { %v688_v13 = vmul.f32 -0.17677669, %v185_v10  ;;  %732 = vpow2.f32 %v216_v15  ;;  %v703_v22 = vmul.f32 -0.25, %v495_v11  ;;  %v721_v24 = vpop.eup %720 }
 0x12b   :  { %v537_v30 = vadd.f32 1.0, %v721_v24  ;;  %v1079_v24 = vshrl.u32 %v34_v19, 7 }
 0x12c   :  { %v218_v16 = vmul.f32 1.442695, %v688_v13  ;;  %v723_v27 = vpop.eup %722  ;;  %v529_v28 = vmul.f32 1.442695, %v703_v22 }
 0x12d   :  { %v188_v17 = vpop.xlane.xlu1 %187  ;;  %v498_v21 = vpop.xlane.xlu0 %497  ;;  %v226_v34 = vadd.f32 1.0, %v723_v27  ;;  %vm38_vm10 = vcmp.lt.s32.totalorder %v1079_v24, 2 }
 0x12e   :  { %v689_v20 = vmul.f32 -0.17677669, %v188_v17  ;;  %734 = vpow2.f32 %v218_v16  ;;  %v704_v25 = vmul.f32 -0.25, %v498_v21  ;;  %v725_v29 = vpop.eup %724 }
 0x12f   :  { %736 = vrcp.f32 %v225_v18  ;;  %v538_v36 = vadd.f32 1.0, %v725_v29 }
 0x130   :  { %v220_v23 = vmul.f32 1.442695, %v689_v20  ;;  %v531_v32 = vmul.f32 1.442695, %v704_v25  ;;  %v727_v33 = vpop.eup %726  ;;  %v273_v25 = vand.u32 127, %v34_v19 }
 0x131   :  { %v501_v31 = vpop.xlane.xlu0 %500  ;;  %v729_v35 = vpop.eup %728  ;;  %v227_v40 = vadd.f32 1.0, %v727_v33 }
 0x132   :  { %738 = vpow2.f32 %v220_v23  ;;  %v191_v37 = vpop.xlane.xlu1 %190  ;;  %v731_v38 = vpop.eup %730  ;;  %v539_v42 = vadd.f32 1.0, %v729_v35  ;;  %v705_v47 = vmul.f32 -0.25, %v501_v31  ;;  %v1082_v33 = vsub.s32 %v273_v25, %v1079_v24 }
 0x133   :  { %740 = vpow2.f32 %v527_v26  ;;  %v690_v43 = vmul.f32 -0.17677669, %v191_v37 }
 0x134   :  { %742 = vpow2.f32 %v529_v28  ;;  %v733_v39 = vpop.eup %732  ;;  %v533_v54 = vmul.f32 1.442695, %v705_v47 }
 0x135   :  { %744 = vrcp.f32 %v537_v30  ;;  %v504_v44 = vpop.xlane.xlu0 %503  ;;  %v228_v46 = vadd.f32 1.0, %v733_v39  ;;  %v222_v51 = vmul.f32 1.442695, %v690_v43 }
 0x136   :  { %746 = vpow2.f32 %v531_v32  ;;  %v706_v49 = vmul.f32 -0.25, %v504_v44 }
 0x137   :  { %748 = vrcp.f32 %v226_v34 }
 0x138   :  { %v735_v41 = vpop.eup %734  ;;  %750 = vrcp.f32 %v538_v36  ;;  %v535_v56 = vmul.f32 1.442695, %v706_v49 }
 0x139   :  { %v737_v45 = vpop.eup %736  ;;  %752 = vlog2.f32 %v731_v38  ;;  %v229_v48 = vadd.f32 1.0, %v735_v41 }
 0x13a   :  { %754 = vrcp.f32 %v227_v40 }
 0x13b   :  { %756 = vrcp.f32 %v539_v42 }
 0x13c   :  { %v739_v50 = vpop.eup %738  ;;  %758 = vlog2.f32 %v737_v45 }
 0x13d   :  { %v230_v52 = vadd.f32 1.0, %v739_v50  ;;  %v741_v53 = vpop.eup %740  ;;  %760 = vrcp.f32 %v228_v46 }
 0x13e   :  { %v743_v55 = vpop.eup %742  ;;  %762 = vrcp.f32 %v229_v48  ;;  %v540_v59 = vadd.f32 1.0, %v741_v53 }
 0x13f   :  { %v745_v57 = vpop.eup %744  ;;  %764 = vpow2.f32 %v222_v51  ;;  %v541_v61 = vadd.f32 1.0, %v743_v55 }
 0x140   :  { %v747_v58 = vpop.eup %746  ;;  %766 = vrcp.f32 %v230_v52 }
 0x141   :  { %v749_v60 = vpop.eup %748  ;;  %768 = vpow2.f32 %v533_v54  ;;  %v542_v63 = vadd.f32 1.0, %v747_v58 }
 0x142   :  { %v751_v62 = vpop.eup %750  ;;  %770 = vpow2.f32 %v535_v56 }
 0x143   :  { %v753_v0 = vpop.eup %752  ;;  %772 = vlog2.f32 %v745_v57 }
 0x144   :  { %v755_v1 = vpop.eup %754  ;;  %774 = vrcp.f32 %v540_v59  ;;  %v249_v32 = vmul.f32 0.6931472, %v753_v0 }
 0x145   :  { %v757_v2 = vpop.eup %756  ;;  %776 = vrcp.f32 %v541_v61 }
 0x146   :  { %v759_v3 = vpop.eup %758  ;;  %778 = vrcp.f32 %v542_v63  ;;  %v277_v45 = vrot.slane %v249_v32, %v1082_v33  ;;  %v845_v32 = vmov 0.0  }
 0x147   :  { %v761_v4 = vpop.eup %760  ;;  %780 = vlog2.f32 %v749_v60  ;;  %v251_v28 = vmul.f32 0.6931472, %v759_v3  ;;  %31 = vst.msk [vmem:[#allocation2] sm:$0x1] %vm30_vm12, %v845_v32  ;;  %32 = vst.msk [vmem:[#allocation3] sm:$0x1] %vm30_vm12, %v845_v32 }
 0x148   :  { %v763_v5 = vpop.eup %762  ;;  %782 = vlog2.f32 %v751_v62 }
 0x149   :  { %v765_v6 = vpop.eup %764  ;;  %784 = vlog2.f32 %v755_v1  ;;  %v281_v38 = vrot.slane %v251_v28, %v1082_v33 }
 0x14a   :  { %v767_v7 = vpop.eup %766  ;;  %786 = vlog2.f32 %v757_v2  ;;  %v231_v8 = vadd.f32 1.0, %v765_v6 }
 0x14b   :  { %v769_v9 = vpop.eup %768  ;;  %788 = vlog2.f32 %v761_v4  ;;  %v307_v54 = vsel %vm306_vm2, %v281_v38, %v277_v45 }
 0x14c   :  { %v771_v10 = vpop.eup %770  ;;  %790 = vrcp.f32 %v231_v8  ;;  %v543_v11 = vadd.f32 1.0, %v769_v9 }
 0x14d   :  { %v773_v12 = vpop.eup %772  ;;  %792 = vlog2.f32 %v763_v5  ;;  %v544_v13 = vadd.f32 1.0, %v771_v10 }
 0x14e   :  { %v775_v14 = vpop.eup %774  ;;  %794 = vlog2.f32 %v767_v7  ;;  %v562_v46 = vmul.f32 0.6931472, %v773_v12 }
 0x14f   :  { %v777_v15 = vpop.eup %776  ;;  %796 = vrcp.f32 %v543_v11 }
 0x150   :  { %v779_v16 = vpop.eup %778  ;;  %798 = vrcp.f32 %v544_v13  ;;  %v588_v59 = vrot.slane %v562_v46, %v1082_v33  ;;  %v348_v46 = vld [vmem:[#allocation2] sm:$0x1] }
 0x151   :  { %v781_v17 = vpop.eup %780  ;;  %800 = vlog2.f32 %v775_v14 }
 0x152   :  { %v783_v18 = vpop.eup %782  ;;  %802 = vlog2.f32 %v777_v15  ;;  %v253_v30 = vmul.f32 0.6931472, %v781_v17 }
 0x153   :  { %v785_v20 = vpop.eup %784  ;;  %804 = vlog2.f32 %v779_v16  ;;  %v564_v39 = vmul.f32 0.6931472, %v783_v18 }
 0x154   :  { %v787_v21 = vpop.eup %786  ;;  %v255_v34 = vmul.f32 0.6931472, %v785_v20  ;;  %v285_v42 = vrot.slane %v253_v30, %v1082_v33 }
 0x155   :  { %v789_v22 = vpop.eup %788  ;;  %v566_v43 = vmul.f32 0.6931472, %v787_v21  ;;  %v592_v51 = vrot.slane %v564_v39, %v1082_v33 }
 0x156   :  { %v791_v23 = vpop.eup %790  ;;  %v257_v36 = vmul.f32 0.6931472, %v789_v22  ;;  %v289_v47 = vrot.slane %v255_v34, %v1082_v33  ;;  %v309_v58 = vsel %vm308_vm3, %v285_v42, %v307_v54 }
 0x157   :  { %v793_v26 = vpop.eup %792  ;;  %806 = vlog2.f32 %v791_v23  ;;  %v596_v56 = vrot.slane %v566_v43, %v1082_v33  ;;  %v617_v5 = vsel %vm306_vm2, %v592_v51, %v588_v59 }
 0x158   :  { %v795_v27 = vpop.eup %794  ;;  %v259_v40 = vmul.f32 0.6931472, %v793_v26  ;;  %v293_v49 = vrot.slane %v257_v36, %v1082_v33  ;;  %v311_v62 = vsel %vm310_vm4, %v289_v47, %v309_v58 }
 0x159   :  { %v797_v29 = vpop.eup %796  ;;  %v261_v44 = vmul.f32 0.6931472, %v795_v27  ;;  %v618_v9 = vsel %vm308_vm3, %v596_v56, %v617_v5 }
 0x15a   :  { %v799_v31 = vpop.eup %798  ;;  %808 = vlog2.f32 %v797_v29  ;;  %v297_v53 = vrot.slane %v259_v40, %v1082_v33  ;;  %v313_v0 = vsel %vm312_vm5, %v293_v49, %v311_v62  ;;  %v642_v49 = vld [vmem:[#allocation3] sm:$0x1] }
 0x15b   :  { %v801_v35 = vpop.eup %800  ;;  %810 = vlog2.f32 %v799_v31  ;;  %v301_v57 = vrot.slane %v261_v44, %v1082_v33 }
 0x15c   :  { %v803_v37 = vpop.eup %802  ;;  %v568_v48 = vmul.f32 0.6931472, %v801_v35  ;;  %v315_v3 = vsel %vm314_vm6, %v297_v53, %v313_v0 }
 0x15d   :  { %v805_v41 = vpop.eup %804  ;;  %v570_v50 = vmul.f32 0.6931472, %v803_v37  ;;  %v317_v7 = vsel %vm316_vm7, %v301_v57, %v315_v3 }
 0x15e   :  { %v572_v52 = vmul.f32 0.6931472, %v805_v41  ;;  %v600_v60 = vrot.slane %v568_v48, %v1082_v33 }
 0x15f   :  { %v604_v63 = vrot.slane %v570_v50, %v1082_v33 }
 0x160   :  { %v608_v4 = vrot.slane %v572_v52, %v1082_v33  ;;  %v619_v12 = vsel %vm310_vm4, %v600_v60, %v618_v9 }
 0x161   :  { %v807_v55 = vpop.eup %806  ;;  %v620_v15 = vsel %vm312_vm5, %v604_v63, %v619_v12 }
 0x162   :  { %v263_v61 = vmul.f32 0.6931472, %v807_v55  ;;  %v621_v17 = vsel %vm314_vm6, %v608_v4, %v620_v15 }
 0x164   :  { %v809_v1 = vpop.eup %808  ;;  %v305_v2 = vrot.slane %v263_v61, %v1082_v33 }
 0x165   :  { %v811_v6 = vpop.eup %810  ;;  %v574_v8 = vmul.f32 0.6931472, %v809_v1 }
 0x166   :  { %v319_v10 = vsel %vm318_vm8, %v305_v2, %v317_v7  ;;  %v576_v11 = vmul.f32 0.6931472, %v811_v6 }
 0x167   :  { %v322_v13 = vsel %vm321_vm9, %v319_v10, 0.0  ;;  %v612_v14 = vrot.slane %v574_v8, %v1082_v33 }
 0x168   :  { %323 = vadd.xlane.f32.xlu1 %v322_v13  ;;  %v616_v16 = vrot.slane %v576_v11, %v1082_v33 }
 0x169   :  { %v622_v18 = vsel %vm316_vm7, %v612_v14, %v621_v17 }
 0x16a   :  { %v623_v19 = vsel %vm318_vm8, %v616_v16, %v622_v18 }
 0x16b   :  { %v625_v20 = vsel %vm321_vm9, %v623_v19, 0.0 }
 0x16c   :  { %626 = vadd.xlane.f32.xlu0 %v625_v20 }
 0x1f5   :  { %v324_v21 = vpop.xlane.xlu1 %323 }
 0x1f6   :  { %v325_v22 = vmul.f32 1.442695, %v324_v21 }
 0x1f8   :  { %812 = vpow2.f32 %v325_v22 }
 0x1f9   :  { %v627_v23 = vpop.xlane.xlu0 %626 }
 0x1fa   :  { %v628_v25 = vmul.f32 1.442695, %v627_v23 }
 0x1fc   :  { %814 = vpow2.f32 %v628_v25 }
 0x202   :  { %v813_v26 = vpop.eup %812 }
 0x203   :  { %v327_v27 = vsel %vm38_vm10, %v813_v26, 0.0 }
 0x204   :  { %v329_v28 = vsel %vm328_vm11, %v327_v27, 0.0 }
 0x205   :  { %330 = vadd.xlane.f32.xlu1 %v329_v28 }
 0x206   :  { %v815_v29 = vpop.eup %814 }
 0x207   :  { %v630_v30 = vsel %vm38_vm10, %v815_v29, 0.0 }
 0x208   :  { %v631_v31 = vsel %vm328_vm11, %v630_v30, 0.0 }
 0x209   :  { %632 = vadd.xlane.f32.xlu0 %v631_v31 }
 0x292   :  { %v331_v33 = vpop.xlane.xlu1 %330 }
 0x293   :  { %v332_v34 = vrot.slane %v331_v33, 4 }
 0x295   :  { %v333_v35 = vadd.f32 %v332_v34, %v331_v33 }
 0x296   :  { %v633_v36 = vpop.xlane.xlu0 %632 }
 0x297   :  { %v334_v24 = vrot.slane %v333_v35, 2  ;;  %v634_v37 = vrot.slane %v633_v36, 4 }
 0x299   :  { %v635_v38 = vadd.f32 %v634_v37, %v633_v36  ;;  %v335_v39 = vadd.f32 %v334_v24, %v333_v35 }
 0x29b   :  { %v636_v40 = vrot.slane %v635_v38, 2  ;;  %v336_v41 = vrot.slane %v335_v39, 1 }
 0x29d   :  { %v637_v42 = vadd.f32 %v636_v40, %v635_v38  ;;  %v337_v43 = vadd.f32 %v336_v41, %v335_v39 }
 0x29f   :  { %707 = vpush %v337_v43  ;;  %v638_v44 = vrot.slane %v637_v42, 1 }
 0x2a1   :  { %v639_v45 = vadd.f32 %v638_v44, %v637_v42 }
 0x2a3   :  { %709 = vpush %v639_v45 }
 0x2d0   :  { %s708_s2 = spop %707 }
 0x2d1   :  { %v339_v47 = vstv %s708_s2 }
 0x2d2   :  { %v349_v48 = vadd.f32 %v348_v46, %v339_v47 }
 0x2d4   :  { %351 = vst.msk [vmem:[#allocation2] sm:$0x1] %vm30_vm12, %v349_v48  ;;  %s710_s5 = spop %709 }
 0x2d5   :  { %v641_v50 = vstv %s710_s5 }
 0x2d6   :  { %v643_v51 = vadd.f32 %v642_v49, %v641_v50 }
 0x2d8   :  { %644 = vst.msk [vmem:[#allocation3] sm:$0x1] %vm30_vm12, %v643_v51 }
 0x2db   :  { %v648_v52 = vld [vmem:[#allocation2] sm:$0x1] }
 0x2dc   :  { %816 = vlog2.f32 %v648_v52 }
 0x2df   :  { %v651_v53 = vld [vmem:[#allocation3] sm:$0x1] }
 0x2e0   :  { %818 = vlog2.f32 %v651_v53 }
 0x2e6   :  { %v817_v54 = vpop.eup %816 }
 0x2e7   :  { %v650_v56 = vmul.f32 0.6931472, %v817_v54 }
 0x2ea   :  { %v819_v55 = vpop.eup %818 }
 0x2eb   :  { %v653_v57 = vmul.f32 0.6931472, %v819_v55 }
 0x2ed   :  { %v654_v58 = vadd.f32 %v653_v57, %v650_v56 }
 0x2ef   :  { %v655_v59 = vmul.f32 -0.5, %v654_v58 }
 0x2f1   :  { %656 = vst.msk [vmem:[#allocation4] sm:$0x1] %vm30_vm12, %v655_v59 }
 0x2f2   :  { %831 = shalt.err (!%p828_p4)
}
 0x2f3   :  { %s832_s1 = scalar_lea.hbm %s1141_s7, 16 }
 0x2f4   :  { %p833_p5 = scmp.ne.s32.totalorder %s1141_s7, %s832_s1  ;;  %p836_p6 = scmp.lt.u32.totalorder %s832_s1, %s1141_s7 }
 0x2f6   :  { %p838_p7 = pnand %p836_p6, %p833_p5 }
 0x2f8   :  { %841 = shalt.err (!%p838_p7)
}
 0x2f9   :  { %668 = dma.vmem_to_hbm [thread:$0]  %s666_s13, 16, %s1141_s7, [#allocation5]  }
 0x2fa   :  { %842 = dma.done.wait [#allocation5], 16  }
 0x2fb   :  { %843 = vsyncadd [#allocation5], 4294967280 }
 0x2fc   :  { %674 = vsyncpa [#allocation5], 1 }

</bundles_post_ra>
